<compile_context>
chip_gen: v7x
topology: tpu7x:2x2x1
jax: 0.10.0
libtpu: 0.0.40
codegen_flags: <defaults>
</compile_context>

<pallas_src>
import functools

import jax
import jax.numpy as jnp
from jax.experimental import pallas as pl
from jax.experimental.pallas import tpu as pltpu

HIDDEN = 256
OUT_DIM = 784          # true generator output (28*28)
OUT_PAD = 896          # 7 * 128 lane-aligned padding of the last layer
SUB = 16               # bf16 sublane packing: one bf16 vreg = (16, 128)


def _round_up(x, m):
    return ((x + m - 1) // m) * m


@functools.lru_cache(maxsize=1)
def _bf16_epilogue():
    """tanh in bf16 only on chips with a bf16 EUP/VPU (v6e / v7x)."""
    try:
        kind = jax.devices()[0].device_kind.lower()
    except Exception:
        return False
    return ("v6" in kind) or ("v7" in kind)


def _choose_batch_tiling(B, max_tm):
    """Pick the grid count first, then the tile size.

    Guarantees >= 2 grid steps whenever the batch is big enough to split
    (so v7x's second TensorCore is used), keeps batch padding under one
    16-row sublane tile, and caps tiles at max_tm rows.
    """
    n_tiles = max(1, pl.cdiv(B, max_tm))
    if n_tiles == 1 and B >= 2 * SUB:
        n_tiles = 2
    tm = _round_up(pl.cdiv(B, n_tiles), SUB)
    return tm, n_tiles * tm          # (TM, padded batch Bp = n_tiles * TM)


def generator_kernel(x_ref, w1_ref, b1_ref, w2_ref, b2_ref, w3_ref, b3_ref,
                     o_ref, *, tanh_dtype):
    # Layer 1: Linear + ReLU. bf16 operands, f32 MXU accumulation; bias/ReLU
    # on the f32 accumulator, cast back to bf16 for the next MXU pass.
    h1 = jnp.dot(x_ref[...], w1_ref[...], preferred_element_type=jnp.float32)
    h1 = jnp.maximum(h1 + b1_ref[...], 0.0).astype(jnp.bfloat16)

    # Layer 2: Linear + ReLU
    h2 = jnp.dot(h1, w2_ref[...], preferred_element_type=jnp.float32)
    h2 = jnp.maximum(h2 + b2_ref[...], 0.0).astype(jnp.bfloat16)

    # Layer 3: Linear + Tanh (lane-dense 896-wide output; padded cols are 0).
    # tanh_dtype is bf16 on v6e/v7x (bf16 EUP ~2x throughput), f32 on v5e.
    h3 = jnp.dot(h2, w3_ref[...], preferred_element_type=jnp.float32)
    z = (h3 + b3_ref[...]).astype(tanh_dtype)
    o_ref[...] = jnp.tanh(z).astype(o_ref.dtype)


@functools.partial(jax.jit, static_argnames=("max_tm", "trim"))
def generator_forward(x, params, *, max_tm=1024, trim=True):
    """x: (B, input_size). Returns (B, 784) bf16; with trim=False returns the
    padded (Bp, 896) bf16 slab so a downstream consumer can fuse the slice."""
    w1, b1, w2, b2, w3, b3 = params
    B, in_dim = x.shape

    TM, Bp = _choose_batch_tiling(B, max_tm)
    if Bp != B:
        x = jnp.pad(x, ((0, Bp - B), (0, 0)))
    x = x.astype(jnp.bfloat16)

    grid = (Bp // TM,)
    tanh_dtype = jnp.bfloat16 if _bf16_epilogue() else jnp.float32

    # Advisory cost estimate (weight-DMA + writeback bound at small B).
    flops = 2 * Bp * (in_dim * HIDDEN + HIDDEN * HIDDEN + HIDDEN * OUT_PAD)
    bytes_accessed = (
        Bp * in_dim * 2
        + (w1.size + w2.size + w3.size) * 2
        + (b1.size + b2.size + b3.size) * 4
        + Bp * OUT_PAD * 2            # bf16 output writeback
    )
    cost = pl.CostEstimate(flops=flops,
                           transcendentals=Bp * OUT_PAD,
                           bytes_accessed=bytes_accessed)

    out = pl.pallas_call(
        functools.partial(generator_kernel, tanh_dtype=tanh_dtype),
        out_shape=jax.ShapeDtypeStruct((Bp, OUT_PAD), jnp.bfloat16),
        grid_spec=pltpu.PrefetchScalarGridSpec(
            num_scalar_prefetch=0,
            grid=grid,
            in_specs=[
                # activations: tiled over batch
                pl.BlockSpec((TM, in_dim), lambda i: (i, 0)),
                # weights / biases: constant block index -> VMEM-resident,
                # no re-DMA across grid steps
                pl.BlockSpec(w1.shape, lambda i: (0, 0)),
                pl.BlockSpec(b1.shape, lambda i: (0, 0)),
                pl.BlockSpec(w2.shape, lambda i: (0, 0)),
                pl.BlockSpec(b2.shape, lambda i: (0, 0)),
                pl.BlockSpec(w3.shape, lambda i: (0, 0)),
                pl.BlockSpec(b3.shape, lambda i: (0, 0)),
            ],
            out_specs=pl.BlockSpec((TM, OUT_PAD), lambda i: (i, 0)),
        ),
        compiler_params=pltpu.CompilerParams(
            dimension_semantics=("parallel",)),
        cost_estimate=cost,
    )(x, w1, b1, w2, b2, w3, b3)

    if trim:
        out = out[:B, :OUT_DIM]      # bf16 slice: half the traffic of f32
    return out


def init_generator_params(key, input_size):
    """Deterministic init mimicking torch.nn.Linear default
    (U(-1/sqrt(fan_in), 1/sqrt(fan_in))). Weights stored (in, out) in bf16;
    biases stored (1, out) in f32. Layer 3 is zero-padded to 896 out lanes."""
    dims = [(input_size, HIDDEN), (HIDDEN, HIDDEN), (HIDDEN, OUT_DIM)]
    params = []
    for li, (fan_in, fan_out) in enumerate(dims):
        key, kw, kb = jax.random.split(key, 3)
        bound = 1.0 / jnp.sqrt(fan_in)
        # PyTorch stores (out, in); build (out, in) then transpose to (in, out).
        w = jax.random.uniform(kw, (fan_out, fan_in), jnp.float32,
                               -bound, bound).T
        b = jax.random.uniform(kb, (1, fan_out), jnp.float32, -bound, bound)
        if li == 2:  # pad last layer to lane-aligned 896 columns (zeros)
            w = jnp.pad(w, ((0, 0), (0, OUT_PAD - OUT_DIM)))
            b = jnp.pad(b, ((0, 0), (0, OUT_PAD - OUT_DIM)))
        params.extend([w.astype(jnp.bfloat16), b.astype(jnp.float32)])
    return tuple(params)


def _reference_forward(x, params):
    """Pure-JAX reference (f32 math on the same bf16 weights)."""
    w1, b1, w2, b2, w3, b3 = params
    h = jnp.maximum(x @ w1.astype(jnp.float32) + b1, 0.0)
    h = jnp.maximum(h @ w2.astype(jnp.float32) + b2, 0.0)
    o = jnp.tanh(h @ w3.astype(jnp.float32) + b3)
    return o[:, :OUT_DIM]


if __name__ == "__main__":
    key = jax.random.PRNGKey(0)
    k_x, k_p = jax.random.split(key)

    batch = 8
    input_size = 32  # latent dim of the generator

    x = jax.random.normal(k_x, (batch, input_size), jnp.float32)
    params = init_generator_params(k_p, input_size)

    out = generator_forward(x, params)
    out = jax.block_until_ready(out)

    assert out.shape == (batch, OUT_DIM), out.shape
    out_f32 = out.astype(jnp.float32)
    assert bool(jnp.all(jnp.isfinite(out_f32)))
    assert bool(jnp.all(jnp.abs(out_f32) <= 1.0))  # tanh range

    ref = _reference_forward(x.astype(jnp.float32), params)
    assert bool(jnp.allclose(out_f32, ref, atol=5e-2, rtol=0)), \
        float(jnp.max(jnp.abs(out_f32 - ref)))

    # Also exercise a batch that splits into >=2 grid tiles (v7x dual-TC path).
    x2 = jax.random.normal(k_x, (40, input_size), jnp.float32)
    out2 = jax.block_until_ready(generator_forward(x2, params))
    ref2 = _reference_forward(x2, params)
    assert out2.shape == (40, OUT_DIM)
    assert bool(jnp.allclose(out2.astype(jnp.float32), ref2, atol=5e-2, rtol=0))

    print("KERNEL_OK")
</pallas_src>

<mosaic_0001>
module attributes {stable_mosaic.version = 11 : i64} {
  func.func @generator_kernel(%arg0: i32, %arg1: memref<16x32xbf16, #tpu.memory_space<vmem>>, %arg2: memref<32x256xbf16, #tpu.memory_space<vmem>>, %arg3: memref<1x256xf32, #tpu.memory_space<vmem>>, %arg4: memref<256x256xbf16, #tpu.memory_space<vmem>>, %arg5: memref<1x256xf32, #tpu.memory_space<vmem>>, %arg6: memref<256x896xbf16, #tpu.memory_space<vmem>>, %arg7: memref<1x896xf32, #tpu.memory_space<vmem>>, %arg8: memref<16x896xbf16, #tpu.memory_space<vmem>>) attributes {dimension_semantics = [#tpu.dimension_semantics<parallel>], iteration_bounds = array<i64: 1>, scalar_prefetch = 0 : i64, scratch_operands = 0 : i64, tpu.core_type = #tpu.core_type<tc>, window_params = [{transform_indices = @transform_0, window_bounds = array<i64: 16, 32>}, {pipeline_mode = #tpu.pipeline_mode<synchronous>, transform_indices = @transform_1, window_bounds = array<i64: 32, 256>}, {pipeline_mode = #tpu.pipeline_mode<synchronous>, transform_indices = @transform_2, window_bounds = array<i64: 1, 256>}, {pipeline_mode = #tpu.pipeline_mode<synchronous>, transform_indices = @transform_3, window_bounds = array<i64: 256, 256>}, {pipeline_mode = #tpu.pipeline_mode<synchronous>, transform_indices = @transform_4, window_bounds = array<i64: 1, 256>}, {pipeline_mode = #tpu.pipeline_mode<synchronous>, transform_indices = @transform_5, window_bounds = array<i64: 256, 896>}, {pipeline_mode = #tpu.pipeline_mode<synchronous>, transform_indices = @transform_6, window_bounds = array<i64: 1, 896>}, {transform_indices = @transform_7, window_bounds = array<i64: 16, 896>}]} {
    %c0 = arith.constant 0 : index
    %c0_0 = arith.constant 0 : index
    %0 = vector.load %arg1[%c0, %c0_0] : memref<16x32xbf16, #tpu.memory_space<vmem>>, vector<16x32xbf16>
    %c0_1 = arith.constant 0 : index
    %c0_2 = arith.constant 0 : index
    %1 = vector.load %arg2[%c0_1, %c0_2] : memref<32x256xbf16, #tpu.memory_space<vmem>>, vector<32x256xbf16>
    %cst = arith.constant dense<0.000000e+00> : vector<16x256xf32>
    %2 = tpu.matmul %0, %1, %cst {dimension_numbers = #tpu.dot_dimension_numbers<[1], [0], [0], [1], [0, 0, 1, 1], [], []>} : vector<16x32xbf16>, vector<32x256xbf16>, vector<16x256xf32> -> vector<16x256xf32>
    %c0_3 = arith.constant 0 : index
    %c0_4 = arith.constant 0 : index
    %3 = vector.load %arg3[%c0_3, %c0_4] : memref<1x256xf32, #tpu.memory_space<vmem>>, vector<1x256xf32>
    %4 = vector.broadcast %3 : vector<1x256xf32> to vector<16x256xf32>
    %5 = arith.addf %2, %4 : vector<16x256xf32>
    %cst_5 = arith.constant 0.000000e+00 : f32
    %6 = vector.broadcast %cst_5 : f32 to vector<16x256xf32>
    %7 = arith.maximumf %5, %6 : vector<16x256xf32>
    %8 = arith.truncf %7 : vector<16x256xf32> to vector<16x256xbf16>
    %c0_6 = arith.constant 0 : index
    %c0_7 = arith.constant 0 : index
    %9 = vector.load %arg4[%c0_6, %c0_7] : memref<256x256xbf16, #tpu.memory_space<vmem>>, vector<256x256xbf16>
    %cst_8 = arith.constant dense<0.000000e+00> : vector<16x256xf32>
    %10 = tpu.matmul %8, %9, %cst_8 {dimension_numbers = #tpu.dot_dimension_numbers<[1], [0], [0], [1], [0, 0, 1, 1], [], []>} : vector<16x256xbf16>, vector<256x256xbf16>, vector<16x256xf32> -> vector<16x256xf32>
    %c0_9 = arith.constant 0 : index
    %c0_10 = arith.constant 0 : index
    %11 = vector.load %arg5[%c0_9, %c0_10] : memref<1x256xf32, #tpu.memory_space<vmem>>, vector<1x256xf32>
    %12 = vector.broadcast %11 : vector<1x256xf32> to vector<16x256xf32>
    %13 = arith.addf %10, %12 : vector<16x256xf32>
    %cst_11 = arith.constant 0.000000e+00 : f32
    %14 = vector.broadcast %cst_11 : f32 to vector<16x256xf32>
    %15 = arith.maximumf %13, %14 : vector<16x256xf32>
    %16 = arith.truncf %15 : vector<16x256xf32> to vector<16x256xbf16>
    %c0_12 = arith.constant 0 : index
    %c0_13 = arith.constant 0 : index
    %17 = vector.load %arg6[%c0_12, %c0_13] : memref<256x896xbf16, #tpu.memory_space<vmem>>, vector<256x896xbf16>
    %cst_14 = arith.constant dense<0.000000e+00> : vector<16x896xf32>
    %18 = tpu.matmul %16, %17, %cst_14 {dimension_numbers = #tpu.dot_dimension_numbers<[1], [0], [0], [1], [0, 0, 1, 1], [], []>} : vector<16x256xbf16>, vector<256x896xbf16>, vector<16x896xf32> -> vector<16x896xf32>
    %c0_15 = arith.constant 0 : index
    %c0_16 = arith.constant 0 : index
    %19 = vector.load %arg7[%c0_15, %c0_16] : memref<1x896xf32, #tpu.memory_space<vmem>>, vector<1x896xf32>
    %20 = vector.broadcast %19 : vector<1x896xf32> to vector<16x896xf32>
    %21 = arith.addf %18, %20 : vector<16x896xf32>
    %22 = math.tanh %21 : vector<16x896xf32>
    %23 = arith.truncf %22 : vector<16x896xf32> to vector<16x896xbf16>
    %c0_17 = arith.constant 0 : index
    %c0_18 = arith.constant 0 : index
    %24 = vector.load %arg8[%c0_17, %c0_18] : memref<16x896xbf16, #tpu.memory_space<vmem>>, vector<16x896xbf16>
    tpu.vector_store %arg8[%c0_17, %c0_18], %23 {strides = array<i32>} : memref<16x896xbf16, #tpu.memory_space<vmem>>, vector<16x896xbf16>,
    return
  }
  func.func @transform_0(%arg0: i32) -> (i32, i32) {
    %c0_i32 = arith.constant 0 : i32
    %c0_i32_0 = arith.constant 0 : i32
    return %arg0, %c0_i32 : i32, i32
  }
  func.func @transform_1(%arg0: i32) -> (i32, i32) {
    %c0_i32 = arith.constant 0 : i32
    %c0_i32_0 = arith.constant 0 : i32
    %c0_i32_1 = arith.constant 0 : i32
    return %c0_i32, %c0_i32_0 : i32, i32
  }
  func.func @transform_2(%arg0: i32) -> (i32, i32) {
    %c0_i32 = arith.constant 0 : i32
    %c0_i32_0 = arith.constant 0 : i32
    %c0_i32_1 = arith.constant 0 : i32
    return %c0_i32, %c0_i32_0 : i32, i32
  }
  func.func @transform_3(%arg0: i32) -> (i32, i32) {
    %c0_i32 = arith.constant 0 : i32
    %c0_i32_0 = arith.constant 0 : i32
    %c0_i32_1 = arith.constant 0 : i32
    return %c0_i32, %c0_i32_0 : i32, i32
  }
  func.func @transform_4(%arg0: i32) -> (i32, i32) {
    %c0_i32 = arith.constant 0 : i32
    %c0_i32_0 = arith.constant 0 : i32
    %c0_i32_1 = arith.constant 0 : i32
    return %c0_i32, %c0_i32_0 : i32, i32
  }
  func.func @transform_5(%arg0: i32) -> (i32, i32) {
    %c0_i32 = arith.constant 0 : i32
    %c0_i32_0 = arith.constant 0 : i32
    %c0_i32_1 = arith.constant 0 : i32
    return %c0_i32, %c0_i32_0 : i32, i32
  }
  func.func @transform_6(%arg0: i32) -> (i32, i32) {
    %c0_i32 = arith.constant 0 : i32
    %c0_i32_0 = arith.constant 0 : i32
    %c0_i32_1 = arith.constant 0 : i32
    return %c0_i32, %c0_i32_0 : i32, i32
  }
  func.func @transform_7(%arg0: i32) -> (i32, i32) {
    %c0_i32 = arith.constant 0 : i32
    %c0_i32_0 = arith.constant 0 : i32
    return %arg0, %c0_i32 : i32, i32
  }
}

</mosaic_0001>

<bundles_post_ra>
// kernel: generator_forward.1
= control target key start
LH: loop header
LB: loop body
LE: loop exit
PB: predicated region body
PF: predicated region fallthrough
CT: control target
= control target key end

     0   :  { %12 = vsyncpa [#allocation3], 0  ;;  %s2070_s0 = inlined_call_operand.vmem [shape: bf16[16,32], index: 0, kind: input, shape index: {}]   ;;  %s2071_s1 = inlined_call_operand.hbm [shape: bf16[32,256], index: 1, kind: input, shape index: {}]   ;;  %s2072_s2 = inlined_call_operand.vmem [shape: f32[1,256], index: 2, kind: input, shape index: {}]   ;;  %s2073_s3 = inlined_call_operand.hbm [shape: bf16[256,256], index: 3, kind: input, shape index: {}]   ;;  %s2074_s4 = inlined_call_operand.vmem [shape: f32[1,256], index: 4, kind: input, shape index: {}]   ;;  %s2075_s5 = inlined_call_operand.hbm [shape: bf16[256,896], index: 5, kind: input, shape index: {}]   ;;  %s2076_s6 = inlined_call_operand.vmem [shape: f32[1,896], index: 6, kind: input, shape index: {}]   ;;  %s2077_s7 = inlined_call_operand.vmem [shape: bf16[16,896], index: 7, kind: output, shape index: {}]  }
   0x1   :  { %13 = vsyncpa [#allocation5], 0  ;;  %s1909_s24 = smov [#allocation4]   ;;  %s1910_s26 = smov [#allocation2]  }
   0x2   :  { %s35_s25 = sshll.u32 %s1909_s24, 4  ;;  %s21_s27 = sshll.u32 %s1910_s26, 4  ;;  %s36_s25 = int_to_ptr.vmem [resolvable:$true] %s35_s25  ;;  %s1957_s27 = int_to_ptr.vmem [resolvable:$true] %s21_s27 }
   0x3   :  { %s1839_s30 = scalar_lea.hbm %s2073_s3, 4096 }
   0x4   :  { %p1840_p0 = scmp.ne.s32.totalorder %s2073_s3, %s1839_s30  ;;  %p1843_p1 = scmp.lt.u32.totalorder %s1839_s30, %s2073_s3 }
   0x6   :  { %p1845_p2 = pnand %p1843_p1, %p1840_p0 }
   0x8   :  { %1848 = shalt.err (!%p1845_p2)
}
   0x9   :  { %s1849_s12 = scalar_lea.vmem %s36_s25, 4096  ;;  %p1854_p4 = scmp.lt.s32.totalorder %s36_s25, %s36_s25 }
   0xa   :  { %p1850_p3 = scmp.ne.s32.totalorder %s36_s25, %s1849_s12  ;;  %p1855_p5 = scmp.lt.s32.totalorder %s1849_s12, %s1849_s12 }
   0xc   :  { %p1856_p6 = por %p1855_p5, %p1854_p4 }
   0xe   :  { %p1857_p7 = pnand %p1856_p6, %p1850_p3 }
  0x10   :  { %1860 = shalt.err (!%p1857_p7)
}
  0x11   :  { %s1911_s13 = smov 128   ;;  %s1912_s14 = smov 8  }
  0x12   :  { %41 = dma.hbm_to_vmem [thread:$0]  %s2073_s3, 4096, %s36_s25, [#allocation5], %s1911_s13, %s1911_s13, %s1912_s14  }
  0x13   :  { %s1861_s19 = scalar_lea.hbm %s2071_s1, 512 }
  0x14   :  { %p1862_p8 = scmp.ne.s32.totalorder %s2071_s1, %s1861_s19  ;;  %p1865_p9 = scmp.lt.u32.totalorder %s1861_s19, %s2071_s1 }
  0x16   :  { %p1867_p10 = pnand %p1865_p9, %p1862_p8 }
  0x18   :  { %1870 = shalt.err (!%p1867_p10)
}
  0x19   :  { %s1871_s24 = scalar_lea.vmem %s1957_s27, 512  ;;  %p1876_p12 = scmp.lt.s32.totalorder %s1957_s27, %s1957_s27 }
  0x1a   :  { %p1872_p11 = scmp.ne.s32.totalorder %s1957_s27, %s1871_s24  ;;  %p1877_p13 = scmp.lt.s32.totalorder %s1871_s24, %s1871_s24 }
  0x1c   :  { %p1878_p0 = por %p1877_p13, %p1876_p12 }
  0x1e   :  { %p1879_p1 = pnand %p1878_p0, %p1872_p11 }
  0x20   :  { %1882 = shalt.err (!%p1879_p1)
}
  0x21   :  { %27 = dma.hbm_to_vmem [thread:$0]  %s2071_s1, 512, %s1957_s27, [#allocation3], %s1911_s13, %s1911_s13, %s1912_s14  }
  0x22   :  { %s1913_s26 = smov [#allocation6]   ;;  %s1883_s8 = scalar_lea.hbm %s2075_s5, 14336 }
  0x23   :  { %s49_s28 = sshll.u32 %s1913_s26, 4  ;;  %p1884_p2 = scmp.ne.s32.totalorder %s2075_s5, %s1883_s8  ;;  %s50_s28 = int_to_ptr.vmem [resolvable:$true] %s49_s28 }
  0x24   :  { %p1887_p3 = scmp.lt.u32.totalorder %s1883_s8, %s2075_s5 }
  0x26   :  { %p1889_p4 = pnand %p1887_p3, %p1884_p2 }
  0x28   :  { %1892 = shalt.err (!%p1889_p4)
}
  0x29   :  { %s1893_s15 = scalar_lea.vmem %s50_s28, 14336  ;;  %p1898_p6 = scmp.lt.s32.totalorder %s50_s28, %s50_s28 }
  0x2a   :  { %p1894_p5 = scmp.ne.s32.totalorder %s50_s28, %s1893_s15  ;;  %p1899_p7 = scmp.lt.s32.totalorder %s1893_s15, %s1893_s15 }
  0x2c   :  { %p1900_p8 = por %p1899_p7, %p1898_p6 }
  0x2e   :  { %p1901_p9 = pnand %p1900_p8, %p1894_p5 }
  0x30   :  { %1904 = shalt.err (!%p1901_p9)
}
  0x31   :  { %s1914_s1 = smov 448   ;;  %s1915_s27 = smov 28  }
  0x32   :  { %55 = dma.hbm_to_vmem [thread:$0]  %s2075_s5, 14336, %s50_s28, [#allocation5], %s1914_s1, %s1914_s1, %s1915_s27  }
  0x33   :  { %1905 = dma.done.wait [#allocation3], 512  }
  0x34   :  { %1906 = vsyncadd [#allocation3], 4294966784 }
  0x35   :  { %1907 = dma.done.wait [#allocation5], 18432  }
  0x36   :  { %1908 = vsyncadd [#allocation5], 4294948864  ;;  %v1916_v0 = vmov 0   ;;  %v1596_v1 = vld [vmem:[#allocation2 + $0x4] ss:$8 sps:$4 sm:$0xff]   ;;  %vm111_vm0 = vcmask 261120  }
  0x37   :  { %147 = vmatprep.mubr.bf16.mxu0 %v1916_v0  ;;  %v1598_v2 = vld [vmem:[#allocation2] ss:$8 sps:$4 sm:$0xff]   ;;  %115 = vmatprep.subr.bf16.mxu0 %v1596_v1  ;;  %v1599_v3 = vld [vmem:[#allocation2 + $0x14] ss:$8 sps:$4 sm:$0xff]   ;;  %v1601_v4 = vld [vmem:[#allocation2 + $0x10] ss:$8 sps:$4 sm:$0xff]  }
  0x38   :  { %116 = vmatpush1.bf16.msra.mxu0 %v1598_v2  ;;  %v1603_v5 = vld [vmem:[#allocation4 + $0x4] ss:$8 sps:$4 sm:$0xff]   ;;  %v1605_v6 = vld [vmem:[#allocation4] ss:$8 sps:$4 sm:$0xff]   ;;  %v1606_v7 = vld [vmem:[#allocation4 + $0x14] ss:$8 sps:$4 sm:$0xff]  }
  0x39   :  { %117 = vmatprep.subr.bf16.mxu0 %v1599_v3  ;;  %v1602_v8 = vld [vmem:[%s2070_s0] sm:$0xff]   ;;  %368 = vmatprep.subr.bf16.mxu1 %v1603_v5  ;;  %v1608_v9 = vld [vmem:[#allocation4 + $0x10] ss:$8 sps:$4 sm:$0xff]   ;;  %v1612_v12 = vld [vmem:[#allocation4 + $0x34] ss:$8 sps:$4 sm:$0xff]   ;;  %v76_v3 = vlaneseq }
  0x3a   :  { %369 = vmatpush1.bf16.msra.mxu1 %v1605_v6  ;;  %v1609_v10 = vld [vmem:[#allocation4 + $0x24] ss:$8 sps:$4 sm:$0xff]   ;;  %v1611_v11 = vld [vmem:[#allocation4 + $0x20] ss:$8 sps:$4 sm:$0xff]   ;;  %v1614_v13 = vld [vmem:[#allocation4 + $0x30] ss:$8 sps:$4 sm:$0xff]  }
  0x3b   :  { %370 = vmatprep.subr.bf16.mxu1 %v1606_v7  ;;  %v1615_v14 = vld [vmem:[#allocation4 + $0x44] ss:$8 sps:$4 sm:$0xff]   ;;  %v1617_v15 = vld [vmem:[#allocation4 + $0x40] ss:$8 sps:$4 sm:$0xff]   ;;  %v1618_v16 = vld [vmem:[#allocation4 + $0x54] ss:$8 sps:$4 sm:$0xff]  }
  0x3c   :  { %118 = vmatpush1.bf16.msra.mxu0 %v1601_v4  ;;  %v1620_v17 = vld [vmem:[#allocation4 + $0x50] ss:$8 sps:$4 sm:$0xff]   ;;  %v1621_v18 = vld [vmem:[#allocation4 + $0x64] ss:$8 sps:$4 sm:$0xff]   ;;  %v1623_v19 = vld [vmem:[#allocation4 + $0x60] ss:$8 sps:$4 sm:$0xff]  }
  0x3d   :  { %v1624_v20 = vld [vmem:[#allocation4 + $0x74] ss:$8 sps:$4 sm:$0xff]   ;;  %v1626_v21 = vld [vmem:[#allocation4 + $0x70] ss:$8 sps:$4 sm:$0xff]   ;;  %v1627_v22 = vld [vmem:[#allocation4 + $0x84] ss:$8 sps:$4 sm:$0xff]  }
  0x3e   :  { %371 = vmatpush1.bf16.msra.mxu1 %v1608_v9  ;;  %v1629_v23 = vld [vmem:[#allocation4 + $0x80] ss:$8 sps:$4 sm:$0xff]   ;;  %v1630_v24 = vld [vmem:[#allocation4 + $0x94] ss:$8 sps:$4 sm:$0xff]   ;;  %v1632_v25 = vld [vmem:[#allocation4 + $0x90] ss:$8 sps:$4 sm:$0xff]  }
  0x3f   :  { %1405 = vmatmul.mubr.msk.bf16.vlgmr.msra.gmra.mrb[0].mxu0 %vm111_vm0, %v1602_v8  ;;  %372 = vmatprep.subr.bf16.mxu1 %v1609_v10  ;;  %v1633_v26 = vld [vmem:[#allocation4 + $0xa4] ss:$8 sps:$4 sm:$0xff]   ;;  %v1635_v27 = vld [vmem:[#allocation4 + $0xa0] ss:$8 sps:$4 sm:$0xff]   ;;  %v1636_v28 = vld [vmem:[#allocation4 + $0xb4] ss:$8 sps:$4 sm:$0xff]  }
  0x40   :  { %v1638_v29 = vld [vmem:[#allocation4 + $0xb0] ss:$8 sps:$4 sm:$0xff]   ;;  %v1639_v30 = vld [vmem:[#allocation4 + $0xc4] ss:$8 sps:$4 sm:$0xff]   ;;  %v1641_v31 = vld [vmem:[#allocation4 + $0xc0] ss:$8 sps:$4 sm:$0xff]  }
  0x41   :  { %v1642_v32 = vld [vmem:[#allocation4 + $0xd4] ss:$8 sps:$4 sm:$0xff]   ;;  %v1644_v33 = vld [vmem:[#allocation4 + $0xd0] ss:$8 sps:$4 sm:$0xff]   ;;  %v1645_v34 = vld [vmem:[#allocation4 + $0xe4] ss:$8 sps:$4 sm:$0xff]  }
  0x42   :  { %373 = vmatpush1.bf16.msra.mxu1 %v1611_v11  ;;  %v1647_v35 = vld [vmem:[#allocation4 + $0xe0] ss:$8 sps:$4 sm:$0xff]   ;;  %v1648_v36 = vld [vmem:[#allocation4 + $0xf4] ss:$8 sps:$4 sm:$0xff]   ;;  %v1650_v37 = vld [vmem:[#allocation4 + $0xf0] ss:$8 sps:$4 sm:$0xff]  }
  0x43   :  { %374 = vmatprep.subr.bf16.mxu1 %v1612_v12  ;;  %v1651_v38 = vld [vmem:[#allocation6] ss:$28 sps:$4 sm:$0xff]   ;;  %v1656_v40 = vld [vmem:[#allocation6 + $0xc] ss:$28 sps:$4 sm:$0xff]   ;;  %v1657_v42 = vld [vmem:[#allocation6 + $0x38] ss:$28 sps:$4 sm:$0xff]  }
  0x44   :  { %v1653_v39 = vld [vmem:[#allocation6 + $0x4] ss:$28 sps:$4 sm:$0xff]   ;;  %v1659_v41 = vld [vmem:[#allocation6 + $0x3c] ss:$28 sps:$4 sm:$0xff]   ;;  %v1665_v43 = vld [vmem:[#allocation6 + $0x74] ss:$28 sps:$4 sm:$0xff]  }
  0x45   :  { %1158 = vmatprep.subr.bf16.mxu0 %v1653_v39  ;;  %v1663_v44 = vld [vmem:[#allocation6 + $0x70] ss:$28 sps:$4 sm:$0xff]   ;;  %v1669_v46 = vld [vmem:[#allocation6 + $0xa8] ss:$28 sps:$4 sm:$0xff]   ;;  %v1675_v48 = vld [vmem:[#allocation6 + $0xe0] ss:$28 sps:$4 sm:$0xff]  }
  0x46   :  { %375 = vmatpush1.bf16.msra.mxu1 %v1614_v13  ;;  %1159 = vmatpush1.bf16.msra.mxu0 %v1651_v38  ;;  %v1671_v45 = vld [vmem:[#allocation6 + $0xac] ss:$28 sps:$4 sm:$0xff]   ;;  %v1677_v47 = vld [vmem:[#allocation6 + $0xe4] ss:$28 sps:$4 sm:$0xff]   ;;  %v1683_v49 = vld [vmem:[#allocation6 + $0x11c] ss:$28 sps:$4 sm:$0xff]  }
  0x47   :  { %376 = vmatprep.subr.bf16.mxu1 %v1615_v14  ;;  %1160 = vmatprep.subr.bf16.mxu0 %v1659_v41  ;;  %v1681_v50 = vld [vmem:[#allocation6 + $0x118] ss:$28 sps:$4 sm:$0xff]   ;;  %v1687_v52 = vld [vmem:[#allocation6 + $0x150] ss:$28 sps:$4 sm:$0xff]   ;;  %v1693_v54 = vld [vmem:[#allocation6 + $0x188] ss:$28 sps:$4 sm:$0xff]  }
  0x48   :  { %v1689_v51 = vld [vmem:[#allocation6 + $0x154] ss:$28 sps:$4 sm:$0xff]   ;;  %v1695_v53 = vld [vmem:[#allocation6 + $0x18c] ss:$28 sps:$4 sm:$0xff]   ;;  %v1701_v55 = vld [vmem:[#allocation6 + $0x1c4] ss:$28 sps:$4 sm:$0xff]  }
  0x49   :  { %v1699_v56 = vld [vmem:[#allocation6 + $0x1c0] ss:$28 sps:$4 sm:$0xff]   ;;  %v1705_v58 = vld [vmem:[#allocation6 + $0x1f8] ss:$28 sps:$4 sm:$0xff]   ;;  %v1711_v60 = vld [vmem:[#allocation6 + $0x230] ss:$28 sps:$4 sm:$0xff]  }
  0x4a   :  { %377 = vmatpush1.bf16.msra.mxu1 %v1617_v15  ;;  %1161 = vmatpush1.bf16.msra.mxu0 %v1657_v42  ;;  %v1707_v57 = vld [vmem:[#allocation6 + $0x1fc] ss:$28 sps:$4 sm:$0xff]   ;;  %v1713_v59 = vld [vmem:[#allocation6 + $0x234] ss:$28 sps:$4 sm:$0xff]   ;;  %v1719_v61 = vld [vmem:[#allocation6 + $0x26c] ss:$28 sps:$4 sm:$0xff]  }
  0x4b   :  { %378 = vmatprep.subr.bf16.mxu1 %v1618_v16  ;;  %1162 = vmatprep.subr.bf16.mxu0 %v1665_v43  ;;  %v1717_v62 = vld [vmem:[#allocation6 + $0x268] ss:$28 sps:$4 sm:$0xff]   ;;  %v1723_v0 = vld [vmem:[#allocation6 + $0x2a0] ss:$28 sps:$4 sm:$0xff]   ;;  %v1729_v2 = vld [vmem:[#allocation6 + $0x2d8] ss:$28 sps:$4 sm:$0xff]  }
  0x4c   :  { %v1725_v63 = vld [vmem:[#allocation6 + $0x2a4] ss:$28 sps:$4 sm:$0xff]   ;;  %v1731_v1 = vld [vmem:[#allocation6 + $0x2dc] ss:$28 sps:$4 sm:$0xff]   ;;  %v2003_v4 = vshrl.u32 %v76_v3, 7 }
  0x4d   :  { %v74_v6 = vld [vmem:[%s2072_s2] sm:$0x3]  ;;  %v1696_v38 = vld [vmem:[#allocation6 + $0x190] ss:$28 sps:$4 sm:$0xff]   ;;  %v1716_v43 = vld [vmem:[#allocation6 + $0x23c] ss:$28 sps:$4 sm:$0xff]  }
  0x4e   :  { %379 = vmatpush1.bf16.msra.mxu1 %v1620_v17  ;;  %1163 = vmatpush1.bf16.msra.mxu0 %v1663_v44  ;;  %v2006_v5 = vsub.s32 0, %v2003_v4  ;;  %v2012_v7 = vsub.s32 1, %v2003_v4  ;;  %v1704_v39 = vld [vmem:[#allocation6 + $0x1cc] ss:$28 sps:$4 sm:$0xff]   ;;  %v1710_v41 = vld [vmem:[#allocation6 + $0x204] ss:$28 sps:$4 sm:$0xff]  }
  0x4f   :  { %380 = vmatprep.subr.bf16.mxu1 %v1621_v18  ;;  %1164 = vmatprep.subr.bf16.mxu0 %v1671_v45  ;;  %v1708_v42 = vld [vmem:[#allocation6 + $0x200] ss:$28 sps:$4 sm:$0xff]   ;;  %v1714_v44 = vld [vmem:[#allocation6 + $0x238] ss:$28 sps:$4 sm:$0xff]  }
  0x50   :  { %v79_v8 = vrot.slane %v74_v6, %v2006_v5  ;;  %v83_v9 = vrot.slane %v74_v6, %v2012_v7  ;;  %v1722_v45 = vld [vmem:[#allocation6 + $0x274] ss:$28 sps:$4 sm:$0xff]  }
  0x52   :  { %381 = vmatpush1.bf16.msra.mxu1 %v1623_v19  ;;  %1165 = vmatpush1.bf16.msra.mxu0 %v1669_v46  ;;  %v1720_v46 = vld [vmem:[#allocation6 + $0x270] ss:$28 sps:$4 sm:$0xff]  }
  0x53   :  { %382 = vmatprep.subr.bf16.mxu1 %v1624_v20  ;;  %1166 = vmatprep.subr.bf16.mxu0 %v1677_v47  ;;  %v1728_v47 = vld [vmem:[#allocation6 + $0x2ac] ss:$28 sps:$4 sm:$0xff]  }
  0x56   :  { %383 = vmatpush1.bf16.msra.mxu1 %v1626_v21  ;;  %1167 = vmatpush1.bf16.msra.mxu0 %v1675_v48  ;;  %v1726_v48 = vld [vmem:[#allocation6 + $0x2a8] ss:$28 sps:$4 sm:$0xff]  }
  0x57   :  { %384 = vmatprep.subr.bf16.mxu1 %v1627_v22  ;;  %1168 = vmatprep.subr.bf16.mxu0 %v1683_v49  ;;  %v1734_v49 = vld [vmem:[#allocation6 + $0x2e4] ss:$28 sps:$4 sm:$0xff]  }
  0x5a   :  { %385 = vmatpush1.bf16.msra.mxu1 %v1629_v23  ;;  %1169 = vmatpush1.bf16.msra.mxu0 %v1681_v50  ;;  %v1732_v50 = vld [vmem:[#allocation6 + $0x2e0] ss:$28 sps:$4 sm:$0xff]  }
  0x5b   :  { %386 = vmatprep.subr.bf16.mxu1 %v1630_v24  ;;  %1170 = vmatprep.subr.bf16.mxu0 %v1689_v51  ;;  %v1654_v24 = vld [vmem:[#allocation6 + $0x8] ss:$28 sps:$4 sm:$0xff]   ;;  %v1737_v51 = vld [vmem:[#allocation6 + $0x314] ss:$28 sps:$4 sm:$0xff]  }
  0x5e   :  { %387 = vmatpush1.bf16.msra.mxu1 %v1632_v25  ;;  %1171 = vmatpush1.bf16.msra.mxu0 %v1687_v52  ;;  %v1662_v25 = vld [vmem:[#allocation6 + $0x44] ss:$28 sps:$4 sm:$0xff]   ;;  %v1740_v52 = vld [vmem:[#allocation6 + $0x31c] ss:$28 sps:$4 sm:$0xff]  }
  0x5f   :  { %388 = vmatprep.subr.bf16.mxu1 %v1633_v26  ;;  %1172 = vmatprep.subr.bf16.mxu0 %v1695_v53  ;;  %v1660_v26 = vld [vmem:[#allocation6 + $0x40] ss:$28 sps:$4 sm:$0xff]   ;;  %v1735_v53 = vld [vmem:[#allocation6 + $0x310] ss:$28 sps:$4 sm:$0xff]  }
  0x62   :  { %389 = vmatpush1.bf16.msra.mxu1 %v1635_v27  ;;  %1173 = vmatpush1.bf16.msra.mxu0 %v1693_v54  ;;  %v1668_v27 = vld [vmem:[#allocation6 + $0x7c] ss:$28 sps:$4 sm:$0xff]  }
  0x63   :  { %390 = vmatprep.subr.bf16.mxu1 %v1636_v28  ;;  %1174 = vmatprep.subr.bf16.mxu0 %v1701_v55  ;;  %v1666_v28 = vld [vmem:[#allocation6 + $0x78] ss:$28 sps:$4 sm:$0xff]   ;;  %v1743_v55 = vld [vmem:[#allocation6 + $0x34c] ss:$28 sps:$4 sm:$0xff]  }
  0x64   :  { %v1738_v54 = vld [vmem:[#allocation6 + $0x318] ss:$28 sps:$4 sm:$0xff]  }
  0x66   :  { %391 = vmatpush1.bf16.msra.mxu1 %v1638_v29  ;;  %1175 = vmatpush1.bf16.msra.mxu0 %v1699_v56  ;;  %v1674_v29 = vld [vmem:[#allocation6 + $0xb4] ss:$28 sps:$4 sm:$0xff]  }
  0x67   :  { %392 = vmatprep.subr.bf16.mxu1 %v1639_v30  ;;  %1176 = vmatprep.subr.bf16.mxu0 %v1707_v57  ;;  %v1672_v30 = vld [vmem:[#allocation6 + $0xb0] ss:$28 sps:$4 sm:$0xff]   ;;  %v1741_v57 = vld [vmem:[#allocation6 + $0x348] ss:$28 sps:$4 sm:$0xff]  }
  0x68   :  { %v1746_v56 = vld [vmem:[#allocation6 + $0x354] ss:$28 sps:$4 sm:$0xff]  }
  0x6a   :  { %393 = vmatpush1.bf16.msra.mxu1 %v1641_v31  ;;  %1177 = vmatpush1.bf16.msra.mxu0 %v1705_v58  ;;  %v1680_v31 = vld [vmem:[#allocation6 + $0xec] ss:$28 sps:$4 sm:$0xff]  }
  0x6b   :  { %394 = vmatprep.subr.bf16.mxu1 %v1642_v32  ;;  %1178 = vmatprep.subr.bf16.mxu0 %v1713_v59  ;;  %v1678_v32 = vld [vmem:[#allocation6 + $0xe8] ss:$28 sps:$4 sm:$0xff]   ;;  %v1744_v58 = vld [vmem:[#allocation6 + $0x350] ss:$28 sps:$4 sm:$0xff]  }
  0x6c   :  { %v1749_v59 = vld [vmem:[#allocation6 + $0x14] ss:$28 sps:$4 sm:$0xff]  }
  0x6e   :  { %395 = vmatpush1.bf16.msra.mxu1 %v1644_v33  ;;  %1179 = vmatpush1.bf16.msra.mxu0 %v1711_v60  ;;  %v1686_v33 = vld [vmem:[#allocation6 + $0x124] ss:$28 sps:$4 sm:$0xff]   ;;  %v1750_v60 = vld [vmem:[#allocation6 + $0x1d8] ss:$28 sps:$4 sm:$0xff]  }
  0x6f   :  { %396 = vmatprep.subr.bf16.mxu1 %v1645_v34  ;;  %1180 = vmatprep.subr.bf16.mxu0 %v1719_v61  ;;  %v1684_v34 = vld [vmem:[#allocation6 + $0x120] ss:$28 sps:$4 sm:$0xff]  }
  0x70   :  { %v196_v61 = vld [vmem:[%s2074_s4] sm:$0x3] }
  0x72   :  { %397 = vmatpush1.bf16.msra.mxu1 %v1647_v35  ;;  %1181 = vmatpush1.bf16.msra.mxu0 %v1717_v62  ;;  %v1692_v35 = vld [vmem:[#allocation6 + $0x15c] ss:$28 sps:$4 sm:$0xff]   ;;  %v201_v62 = vrot.slane %v196_v61, %v2006_v5 }
  0x73   :  { %398 = vmatprep.subr.bf16.mxu1 %v1648_v36  ;;  %1182 = vmatprep.subr.bf16.mxu0 %v1725_v63  ;;  %v1690_v36 = vld [vmem:[#allocation6 + $0x158] ss:$28 sps:$4 sm:$0xff]   ;;  %v205_v63 = vrot.slane %v196_v61, %v2012_v7 }
  0x74   :  { %v1810_v61 = vld [vmem:[#allocation6 + $0x35c] ss:$28 sps:$4 sm:$0xff]  }
  0x76   :  { %399 = vmatpush1.bf16.msra.mxu1 %v1650_v37  ;;  %1183 = vmatpush1.bf16.msra.mxu0 %v1723_v0  ;;  %v1698_v37 = vld [vmem:[#allocation6 + $0x194] ss:$28 sps:$4 sm:$0xff]  }
  0x77   :  { %1201 = vmatprep.subr.bf16.mxu1 %v1656_v40  ;;  %1184 = vmatprep.subr.bf16.mxu0 %v1731_v1  ;;  %v1702_v40 = vld [vmem:[#allocation6 + $0x1c8] ss:$28 sps:$4 sm:$0xff]  }
  0x7a   :  { %1185 = vmatpush1.bf16.msra.mxu0 %v1729_v2 }
  0x7b   :  { %1186 = vmatprep.subr.bf16.mxu0 %v1737_v51  ;;  %v1795_v51 = vld [vmem:[#allocation6 + $0x244] ss:$28 sps:$4 sm:$0xff]  }
  0x7e   :  { %1187 = vmatpush1.bf16.msra.mxu0 %v1735_v53  ;;  %v1798_v53 = vld [vmem:[#allocation6 + $0x27c] ss:$28 sps:$4 sm:$0xff]  }
  0x7f   :  { %1188 = vmatprep.subr.bf16.mxu0 %v1743_v55  ;;  %v1801_v55 = vld [vmem:[#allocation6 + $0x2b4] ss:$28 sps:$4 sm:$0xff]  }
  0x82   :  { %1189 = vmatpush1.bf16.msra.mxu0 %v1741_v57  ;;  %v1804_v57 = vld [vmem:[#allocation6 + $0x2ec] ss:$28 sps:$4 sm:$0xff]  }
  0x83   :  { %1244 = vmatprep.subr.bf16.mxu0 %v1749_v59  ;;  %v1807_v59 = vld [vmem:[#allocation6 + $0x324] ss:$28 sps:$4 sm:$0xff]  }
 0x112   :  { %v149_v10 = vpop.f32.mrb[0].mxu0 }
 0x113   :  { %v150_v11 = vadd.f32 %v149_v10, %v79_v8  ;;  %v151_v12 = vpop.f32.mrb[1].mxu0 }
 0x114   :  { %v152_v13 = vadd.f32 %v151_v12, %v83_v9  ;;  %v153_v14 = vpop.f32.mrb[2].mxu0 }
 0x115   :  { %v154_v15 = vadd.f32 %v153_v14, %v79_v8  ;;  %v155_v16 = vpop.f32.mrb[3].mxu0  ;;  %v158_v18 = vmax.f32 %v150_v11, 0.0 }
 0x116   :  { %v156_v17 = vadd.f32 %v155_v16, %v83_v9  ;;  %v159_v20 = vmax.f32 %v152_v13, 0.0 }
 0x117   :  { %v160_v19 = vmax.f32 %v154_v15, 0.0 }
 0x118   :  { %v161_v21 = vmax.f32 %v156_v17, 0.0  ;;  %v1747_v17 = vld [vmem:[#allocation6 + $0x10] ss:$28 sps:$4 sm:$0xff]  }
 0x119   :  { %v162_v22 = vpack.c.bf16 %v160_v19, %v158_v18  ;;  %v1751_v18 = vld [vmem:[#allocation6 + $0x18] ss:$28 sps:$4 sm:$0xff]   ;;  %v1754_v19 = vld [vmem:[#allocation6 + $0x4c] ss:$28 sps:$4 sm:$0xff]  }
 0x11a   :  { %v163_v23 = vpack.c.bf16 %v161_v21, %v159_v20  ;;  %v1755_v20 = vld [vmem:[#allocation6 + $0x210] ss:$28 sps:$4 sm:$0xff]   ;;  %v1752_v21 = vld [vmem:[#allocation6 + $0x48] ss:$28 sps:$4 sm:$0xff]  }
 0x11c   :  { %400 = vmatprep.mubr.bf16.mxu1 %v163_v23  ;;  %v1759_v23 = vld [vmem:[#allocation6 + $0x84] ss:$28 sps:$4 sm:$0xff]  }
 0x11d   :  { %401 = vmatmul.mubr.bf16.vlgmr.msra.gmra.mrb[0].mxu1 %v162_v22  ;;  %v1756_v22 = vld [vmem:[#allocation6 + $0x50] ss:$28 sps:$4 sm:$0xff]  }
 0x11e   :  { %1202 = vmatpush1.bf16.msra.mxu1 %v1654_v24  ;;  %v1760_v24 = vld [vmem:[#allocation6 + $0x248] ss:$28 sps:$4 sm:$0xff]  }
 0x11f   :  { %1203 = vmatprep.subr.bf16.mxu1 %v1662_v25  ;;  %v1757_v25 = vld [vmem:[#allocation6 + $0x80] ss:$28 sps:$4 sm:$0xff]  }
 0x122   :  { %1204 = vmatpush1.bf16.msra.mxu1 %v1660_v26  ;;  %v1761_v26 = vld [vmem:[#allocation6 + $0x88] ss:$28 sps:$4 sm:$0xff]  }
 0x123   :  { %1205 = vmatprep.subr.bf16.mxu1 %v1668_v27  ;;  %v1764_v27 = vld [vmem:[#allocation6 + $0xbc] ss:$28 sps:$4 sm:$0xff]  }
 0x126   :  { %1206 = vmatpush1.bf16.msra.mxu1 %v1666_v28  ;;  %v1765_v28 = vld [vmem:[#allocation6 + $0x280] ss:$28 sps:$4 sm:$0xff]  }
 0x127   :  { %1207 = vmatprep.subr.bf16.mxu1 %v1674_v29  ;;  %v1762_v29 = vld [vmem:[#allocation6 + $0xb8] ss:$28 sps:$4 sm:$0xff]  }
 0x12a   :  { %1208 = vmatpush1.bf16.msra.mxu1 %v1672_v30  ;;  %v1766_v30 = vld [vmem:[#allocation6 + $0xc0] ss:$28 sps:$4 sm:$0xff]  }
 0x12b   :  { %1209 = vmatprep.subr.bf16.mxu1 %v1680_v31  ;;  %v1769_v31 = vld [vmem:[#allocation6 + $0xf4] ss:$28 sps:$4 sm:$0xff]  }
 0x12e   :  { %1210 = vmatpush1.bf16.msra.mxu1 %v1678_v32  ;;  %v1770_v32 = vld [vmem:[#allocation6 + $0x2b8] ss:$28 sps:$4 sm:$0xff]  }
 0x12f   :  { %1211 = vmatprep.subr.bf16.mxu1 %v1686_v33  ;;  %v1767_v33 = vld [vmem:[#allocation6 + $0xf0] ss:$28 sps:$4 sm:$0xff]  }
 0x132   :  { %1212 = vmatpush1.bf16.msra.mxu1 %v1684_v34  ;;  %v1771_v34 = vld [vmem:[#allocation6 + $0xf8] ss:$28 sps:$4 sm:$0xff]  }
 0x133   :  { %1213 = vmatprep.subr.bf16.mxu1 %v1692_v35  ;;  %v1774_v35 = vld [vmem:[#allocation6 + $0x12c] ss:$28 sps:$4 sm:$0xff]  }
 0x136   :  { %1214 = vmatpush1.bf16.msra.mxu1 %v1690_v36  ;;  %v1775_v36 = vld [vmem:[#allocation6 + $0x2f0] ss:$28 sps:$4 sm:$0xff]  }
 0x137   :  { %1215 = vmatprep.subr.bf16.mxu1 %v1698_v37  ;;  %v1772_v37 = vld [vmem:[#allocation6 + $0x128] ss:$28 sps:$4 sm:$0xff]  }
 0x13a   :  { %1216 = vmatpush1.bf16.msra.mxu1 %v1696_v38  ;;  %v1776_v38 = vld [vmem:[#allocation6 + $0x130] ss:$28 sps:$4 sm:$0xff]  }
 0x13b   :  { %1217 = vmatprep.subr.bf16.mxu1 %v1704_v39  ;;  %v1779_v39 = vld [vmem:[#allocation6 + $0x164] ss:$28 sps:$4 sm:$0xff]  }
 0x13e   :  { %1218 = vmatpush1.bf16.msra.mxu1 %v1702_v40  ;;  %v1780_v40 = vld [vmem:[#allocation6 + $0x328] ss:$28 sps:$4 sm:$0xff]  }
 0x13f   :  { %1219 = vmatprep.subr.bf16.mxu1 %v1710_v41  ;;  %v1777_v41 = vld [vmem:[#allocation6 + $0x160] ss:$28 sps:$4 sm:$0xff]  }
 0x142   :  { %1220 = vmatpush1.bf16.msra.mxu1 %v1708_v42  ;;  %v1781_v42 = vld [vmem:[#allocation6 + $0x168] ss:$28 sps:$4 sm:$0xff]  }
 0x143   :  { %1221 = vmatprep.subr.bf16.mxu1 %v1716_v43  ;;  %v1784_v43 = vld [vmem:[#allocation6 + $0x19c] ss:$28 sps:$4 sm:$0xff]  }
 0x146   :  { %1222 = vmatpush1.bf16.msra.mxu1 %v1714_v44  ;;  %v1785_v44 = vld [vmem:[#allocation6 + $0x360] ss:$28 sps:$4 sm:$0xff]  }
 0x147   :  { %1223 = vmatprep.subr.bf16.mxu1 %v1722_v45  ;;  %v1782_v45 = vld [vmem:[#allocation6 + $0x198] ss:$28 sps:$4 sm:$0xff]  }
 0x14a   :  { %1224 = vmatpush1.bf16.msra.mxu1 %v1720_v46  ;;  %v1786_v46 = vld [vmem:[#allocation6 + $0x1a0] ss:$28 sps:$4 sm:$0xff]  }
 0x14b   :  { %1225 = vmatprep.subr.bf16.mxu1 %v1728_v47  ;;  %v1789_v47 = vld [vmem:[#allocation6 + $0x1d4] ss:$28 sps:$4 sm:$0xff]  }
 0x14e   :  { %1226 = vmatpush1.bf16.msra.mxu1 %v1726_v48  ;;  %v1787_v48 = vld [vmem:[#allocation6 + $0x1d0] ss:$28 sps:$4 sm:$0xff]  }
 0x14f   :  { %1227 = vmatprep.subr.bf16.mxu1 %v1734_v49  ;;  %v1792_v49 = vld [vmem:[#allocation6 + $0x20c] ss:$28 sps:$4 sm:$0xff]  }
 0x152   :  { %1228 = vmatpush1.bf16.msra.mxu1 %v1732_v50  ;;  %v1790_v50 = vld [vmem:[#allocation6 + $0x208] ss:$28 sps:$4 sm:$0xff]  }
 0x153   :  { %1229 = vmatprep.subr.bf16.mxu1 %v1740_v52  ;;  %v1793_v52 = vld [vmem:[#allocation6 + $0x240] ss:$28 sps:$4 sm:$0xff]  }
 0x156   :  { %1230 = vmatpush1.bf16.msra.mxu1 %v1738_v54  ;;  %v1796_v54 = vld [vmem:[#allocation6 + $0x278] ss:$28 sps:$4 sm:$0xff]  }
 0x157   :  { %1231 = vmatprep.subr.bf16.mxu1 %v1746_v56  ;;  %v1799_v56 = vld [vmem:[#allocation6 + $0x2b0] ss:$28 sps:$4 sm:$0xff]  }
 0x15a   :  { %1232 = vmatpush1.bf16.msra.mxu1 %v1744_v58  ;;  %v1802_v58 = vld [vmem:[#allocation6 + $0x2e8] ss:$28 sps:$4 sm:$0xff]  }
 0x15b   :  { %1566 = vmatprep.subr.bf16.mxu1 %v1750_v60  ;;  %v1805_v60 = vld [vmem:[#allocation6 + $0x320] ss:$28 sps:$4 sm:$0xff]  }
 0x1f0   :  { %v402_v0 = vpop.f32.mrb[0].mxu1 }
 0x1f1   :  { %v403_v1 = vadd.f32 %v402_v0, %v201_v62  ;;  %v404_v2 = vpop.f32.mrb[1].mxu1  ;;  %v2031_v0 = vld [vmem:[%s2076_s6] sm:$0xff] }
 0x1f2   :  { %v405_v3 = vadd.f32 %v404_v2, %v205_v63  ;;  %v406_v6 = vpop.f32.mrb[2].mxu1  ;;  %v550_v2 = vrot.slane %v2031_v0, %v2006_v5 }
 0x1f3   :  { %v407_v8 = vadd.f32 %v406_v6, %v201_v62  ;;  %v408_v9 = vpop.f32.mrb[3].mxu1  ;;  %v411_v11 = vmax.f32 %v403_v1, 0.0  ;;  %v1808_v62 = vld [vmem:[#allocation6 + $0x358] ss:$28 sps:$4 sm:$0xff]   ;;  %v561_v1 = vsub.s32 3, %v2003_v4  ;;  %v554_v6 = vrot.slane %v2031_v0, %v2012_v7 }
 0x1f4   :  { %v409_v10 = vadd.f32 %v408_v9, %v205_v63  ;;  %v412_v13 = vmax.f32 %v405_v3, 0.0  ;;  %v557_v63 = vsub.s32 2, %v2003_v4 }
 0x1f5   :  { %v413_v12 = vmax.f32 %v407_v8, 0.0  ;;  %v562_v8 = vrot.slane %v2031_v0, %v561_v1 }
 0x1f6   :  { %v414_v14 = vmax.f32 %v409_v10, 0.0  ;;  %v558_v3 = vrot.slane %v2031_v0, %v557_v63 }
 0x1f7   :  { %v2021_v15 = vpack.c.bf16 %v413_v12, %v411_v11 }
 0x1f8   :  { %v416_v16 = vpack.c.bf16 %v414_v14, %v412_v13 }
 0x1fa   :  { %1190 = vmatprep.mubr.bf16.mxu0 %v416_v16  ;;  %1233 = vmatprep.mubr.bf16.mxu1 %v416_v16 }
 0x1fb   :  { %1191 = vmatmul.mubr.bf16.vlgmr.msra.gmra.mrb[4].mxu0 %v2021_v15  ;;  %1234 = vmatmul.mubr.bf16.vlgmr.msra.gmra.mrb[4].mxu1 %v2021_v15 }
 0x1fc   :  { %1245 = vmatpush1.bf16.msra.mxu0 %v1747_v17  ;;  %1567 = vmatpush3.bf16.msra.mxu1 %v1751_v18 }
 0x1fd   :  { %1276 = vmatprep.mubr.bf16.mxu0 %v416_v16  ;;  %1319 = vmatprep.mubr.bf16.mxu1 %v416_v16 }
 0x1fe   :  { %1246 = vmatprep.subr.bf16.mxu0 %v1754_v19  ;;  %1568 = vmatprep.subr.bf16.mxu1 %v1755_v20 }
 0x200   :  { %1247 = vmatpush1.bf16.msra.mxu0 %v1752_v21  ;;  %1569 = vmatpush3.bf16.msra.mxu1 %v1756_v22 }
 0x201   :  { %1248 = vmatprep.subr.bf16.mxu0 %v1759_v23  ;;  %1570 = vmatprep.subr.bf16.mxu1 %v1760_v24 }
 0x204   :  { %1249 = vmatpush1.bf16.msra.mxu0 %v1757_v25  ;;  %1571 = vmatpush3.bf16.msra.mxu1 %v1761_v26 }
 0x205   :  { %1250 = vmatprep.subr.bf16.mxu0 %v1764_v27  ;;  %1572 = vmatprep.subr.bf16.mxu1 %v1765_v28 }
 0x208   :  { %1251 = vmatpush1.bf16.msra.mxu0 %v1762_v29  ;;  %1573 = vmatpush3.bf16.msra.mxu1 %v1766_v30 }
 0x209   :  { %1252 = vmatprep.subr.bf16.mxu0 %v1769_v31  ;;  %1574 = vmatprep.subr.bf16.mxu1 %v1770_v32 }
 0x20c   :  { %1253 = vmatpush1.bf16.msra.mxu0 %v1767_v33  ;;  %1575 = vmatpush3.bf16.msra.mxu1 %v1771_v34 }
 0x20d   :  { %1254 = vmatprep.subr.bf16.mxu0 %v1774_v35  ;;  %1576 = vmatprep.subr.bf16.mxu1 %v1775_v36  ;;  %v573_v35 = vsub.s32 6, %v2003_v4 }
 0x210   :  { %1255 = vmatpush1.bf16.msra.mxu0 %v1772_v37  ;;  %1577 = vmatpush3.bf16.msra.mxu1 %v1776_v38  ;;  %v574_v37 = vrot.slane %v2031_v0, %v573_v35 }
 0x211   :  { %1256 = vmatprep.subr.bf16.mxu0 %v1779_v39  ;;  %1578 = vmatprep.subr.bf16.mxu1 %v1780_v40 }
 0x214   :  { %1257 = vmatpush1.bf16.msra.mxu0 %v1777_v41  ;;  %1579 = vmatpush3.bf16.msra.mxu1 %v1781_v42 }
 0x215   :  { %1258 = vmatprep.subr.bf16.mxu0 %v1784_v43  ;;  %1580 = vmatprep.subr.bf16.mxu1 %v1785_v44 }
 0x218   :  { %1259 = vmatpush1.bf16.msra.mxu0 %v1782_v45  ;;  %1581 = vmatpush3.bf16.msra.mxu1 %v1786_v46 }
 0x219   :  { %1260 = vmatprep.subr.bf16.mxu0 %v1789_v47 }
 0x21b   :  { %1320 = vmatmul.mubr.bf16.vlgmr.msra.gmra.mrb[8].mxu1 %v2021_v15 }
 0x21c   :  { %1261 = vmatpush1.bf16.msra.mxu0 %v1787_v48 }
 0x21d   :  { %1262 = vmatprep.subr.bf16.mxu0 %v1792_v49  ;;  %v565_v49 = vsub.s32 4, %v2003_v4 }
 0x220   :  { %1263 = vmatpush1.bf16.msra.mxu0 %v1790_v50  ;;  %v569_v50 = vsub.s32 5, %v2003_v4 }
 0x221   :  { %1264 = vmatprep.subr.bf16.mxu0 %v1795_v51  ;;  %v566_v51 = vrot.slane %v2031_v0, %v565_v49 }
 0x224   :  { %1265 = vmatpush1.bf16.msra.mxu0 %v1793_v52  ;;  %v570_v52 = vrot.slane %v2031_v0, %v569_v50 }
 0x225   :  { %1266 = vmatprep.subr.bf16.mxu0 %v1798_v53 }
 0x228   :  { %1267 = vmatpush1.bf16.msra.mxu0 %v1796_v54 }
 0x229   :  { %1268 = vmatprep.subr.bf16.mxu0 %v1801_v55 }
 0x22c   :  { %1269 = vmatpush1.bf16.msra.mxu0 %v1799_v56 }
 0x22d   :  { %1270 = vmatprep.subr.bf16.mxu0 %v1804_v57 }
 0x230   :  { %1271 = vmatpush1.bf16.msra.mxu0 %v1802_v58 }
 0x231   :  { %1272 = vmatprep.subr.bf16.mxu0 %v1807_v59 }
 0x234   :  { %1273 = vmatpush1.bf16.msra.mxu0 %v1805_v60 }
 0x235   :  { %1274 = vmatprep.subr.bf16.mxu0 %v1810_v61 }
 0x238   :  { %1275 = vmatpush1.bf16.msra.mxu0 %v1808_v62 }
 0x23b   :  { %1277 = vmatmul.mubr.bf16.vlgmr.msra.gmra.mrb[8].mxu0 %v2021_v15 }
 0x2ce   :  { %v1192_v9 = vpop.f32.mrb[4].mxu0  ;;  %v1235_v10 = vpop.f32.mrb[4].mxu1 }
 0x2cf   :  { %v1193_v11 = vadd.f32 %v1192_v9, %v550_v2  ;;  %v1236_v12 = vadd.f32 %v1235_v10, %v558_v3  ;;  %v1194_v13 = vpop.f32.mrb[5].mxu0  ;;  %v1237_v14 = vpop.f32.mrb[5].mxu1 }
 0x2d0   :  { %v1195_v15 = vadd.f32 %v1194_v13, %v554_v6  ;;  %v1238_v16 = vadd.f32 %v1237_v14, %v562_v8  ;;  %v1196_v17 = vpop.f32.mrb[6].mxu0  ;;  %v1239_v18 = vpop.f32.mrb[6].mxu1 }
 0x2d1   :  { %1811 = vtanh.f32 %v1193_v11  ;;  %v1197_v19 = vadd.f32 %v1196_v17, %v550_v2  ;;  %v1198_v5 = vpop.f32.mrb[7].mxu0  ;;  %v1241_v20 = vpop.f32.mrb[7].mxu1  ;;  %v1240_v21 = vadd.f32 %v1239_v18, %v558_v3 }
 0x2d2   :  { %1813 = vtanh.f32 %v1236_v12  ;;  %v1199_v7 = vadd.f32 %v1198_v5, %v554_v6  ;;  %v1242_v22 = vadd.f32 %v1241_v20, %v562_v8 }
 0x2d3   :  { %1815 = vtanh.f32 %v1195_v15 }
 0x2d4   :  { %1817 = vtanh.f32 %v1238_v16 }
 0x2d5   :  { %1819 = vtanh.f32 %v1197_v19 }
 0x2d6   :  { %1821 = vtanh.f32 %v1240_v21 }
 0x2d7   :  { %1823 = vtanh.f32 %v1199_v7 }
 0x2d8   :  { %1825 = vtanh.f32 %v1242_v22 }
 0x2db   :  { %v1812_v23 = vpop.eup %1811 }
 0x2dc   :  { %v1814_v24 = vpop.eup %1813 }
 0x2dd   :  { %v1816_v25 = vpop.eup %1815 }
 0x2de   :  { %v1818_v26 = vpop.eup %1817  ;;  %v1558_v27 = vpack.c.bf16 %v1816_v25, %v1812_v23 }
 0x2df   :  { %v1820_v28 = vpop.eup %1819  ;;  %v1559_v29 = vpack.c.bf16 %v1818_v26, %v1814_v24 }
 0x2e0   :  { %v1822_v30 = vpop.eup %1821  ;;  %1386 = vst [vmem:[%s2077_s7] sm:$0xff] %v1558_v27 }
 0x2e1   :  { %v1824_v31 = vpop.eup %1823  ;;  %1387 = vst [vmem:[%s2077_s7 + $0x8] sm:$0xff] %v1559_v29 }
 0x2e2   :  { %v1826_v32 = vpop.eup %1825  ;;  %v1562_v33 = vpack.c.bf16 %v1824_v31, %v1820_v28 }
 0x2e3   :  { %v1563_v34 = vpack.c.bf16 %v1826_v32, %v1822_v30 }
 0x2e4   :  { %1390 = vst [vmem:[%s2077_s7 + $0x1c] sm:$0xff] %v1562_v33 }
 0x2e5   :  { %1391 = vst [vmem:[%s2077_s7 + $0x24] sm:$0xff] %v1563_v34 }
 0x2ee   :  { %v1582_v36 = vpop.f32.mrb[8].mxu1 }
 0x2ef   :  { %v1583_v38 = vpop.f32.mrb[9].mxu1 }
 0x2f0   :  { %v1584_v39 = vadd.f32 %v1583_v38, %v1582_v36  ;;  %v1585_v40 = vpop.f32.mrb[10].mxu1 }
 0x2f1   :  { %v1586_v41 = vpop.f32.mrb[11].mxu1 }
 0x2f2   :  { %v1322_v42 = vadd.f32 %v1584_v39, %v574_v37  ;;  %v1587_v43 = vadd.f32 %v1586_v41, %v1585_v40 }
 0x2f4   :  { %1827 = vtanh.f32 %v1322_v42  ;;  %v1325_v44 = vadd.f32 %v1587_v43, %v574_v37 }
 0x2f6   :  { %1829 = vtanh.f32 %v1325_v44 }
 0x2fe   :  { %v1828_v45 = vpop.eup %1827 }
 0x2ff   :  { %v1561_v46 = vpack.c.bf16 %v1828_v45, %v1828_v45 }
 0x300   :  { %v1830_v47 = vpop.eup %1829 }
 0x301   :  { %1389 = vst [vmem:[%s2077_s7 + $0x18] sm:$0xf] %v1561_v46  ;;  %v1565_v48 = vpack.c.bf16 %v1830_v47, %v1830_v47 }
 0x303   :  { %1393 = vst [vmem:[%s2077_s7 + $0x34] sm:$0xf] %v1565_v48 }
 0x30e   :  { %v1278_v53 = vpop.f32.mrb[8].mxu0 }
 0x30f   :  { %v1279_v54 = vadd.f32 %v1278_v53, %v566_v51  ;;  %v1280_v55 = vpop.f32.mrb[9].mxu0 }
 0x310   :  { %v1281_v56 = vadd.f32 %v1280_v55, %v570_v52  ;;  %v1282_v57 = vpop.f32.mrb[10].mxu0 }
 0x311   :  { %1831 = vtanh.f32 %v1279_v54  ;;  %v1283_v58 = vadd.f32 %v1282_v57, %v566_v51  ;;  %v1284_v59 = vpop.f32.mrb[11].mxu0 }
 0x312   :  { %1833 = vtanh.f32 %v1281_v56  ;;  %v1285_v60 = vadd.f32 %v1284_v59, %v570_v52 }
 0x313   :  { %1835 = vtanh.f32 %v1283_v58 }
 0x314   :  { %1837 = vtanh.f32 %v1285_v60 }
 0x31b   :  { %v1832_v61 = vpop.eup %1831 }
 0x31c   :  { %v1834_v62 = vpop.eup %1833 }
 0x31d   :  { %v1836_v63 = vpop.eup %1835  ;;  %v1560_v4 = vpack.c.bf16 %v1834_v62, %v1832_v61 }
 0x31e   :  { %v1838_v1 = vpop.eup %1837 }
 0x31f   :  { %1388 = vst [vmem:[%s2077_s7 + $0x10] sm:$0xff] %v1560_v4  ;;  %v1564_v0 = vpack.c.bf16 %v1838_v1, %v1836_v63 }
 0x321   :  { %1392 = vst [vmem:[%s2077_s7 + $0x2c] sm:$0xff] %v1564_v0 }
 0x322   :  { %1398 = vsyncpa [#allocation3], 1 }
 0x323   :  { %1399 = vsyncpa [#allocation5], 1 }

</bundles_post_ra>
